<compile_context>
chip_gen: v5e
topology: v5e:2x2
jax: 0.10.0
libtpu: 0.0.40
codegen_flags: <defaults>
</compile_context>

<pallas_src>
import jax
import jax.numpy as jnp
from jax.experimental import pallas as pl
from jax.experimental.pallas import tpu as pltpu


def attention_kernel(v_ref, q_ref, wv_ref, wq_ref, bq_ref, wx_ref, bx_ref, out_ref):
    # v_ref:  (BT, Cv, HW)  batch tile, channels x flattened spatial
    # q_ref:  (BT, 1, Cq)   batch tile of question vectors (rows)
    # wv_ref: (M, Cv)       v_conv weight (1x1 conv, no bias)
    # wq_ref: (M, Cq), bq_ref: (M, 1)   q_lin weight / bias
    # wx_ref: (G, M),  bx_ref: (G, 1)   x_conv weight / bias
    # out_ref: (BT, G, HW)
    wv = wv_ref[...]
    wq = wq_ref[...]
    bq = bq_ref[...]
    wx = wx_ref[...]
    bx = bx_ref[...]

    bt = v_ref.shape[0]
    for i in range(bt):  # static unroll over the (small) batch tile
        v = v_ref[i]                                             # (Cv, HW)

        # v_conv: 1x1 conv == channel matmul shared over all spatial lanes (MXU).
        v_feat = jnp.dot(wv, v, preferred_element_type=jnp.float32)   # (M, HW)

        # q_lin for this sample: (M,Cq)*(1,Cq) lane-reduce -> (M,1) column
        # (M lands directly on sublanes, ready to broadcast over HW lanes).
        q_row = q_ref[i]                                         # (1, Cq)
        q_col = jnp.sum(wq * q_row, axis=-1, keepdims=True) + bq  # (M, 1)

        # tile_2d_over_nd + Fusion: q_col lane-broadcasts over HW lanes.
        #   f = -(v - q)^2 + relu(v + q)
        diff = v_feat - q_col
        ssum = v_feat + q_col
        x = jnp.maximum(ssum, 0.0) - diff * diff                 # (M, HW)

        # x_conv: 1x1 conv with bias (MXU), lane-dense unmasked store.
        out_ref[i] = jnp.dot(wx, x, preferred_element_type=jnp.float32) + bx  # (G, HW)


def _pick_batch_tile(n, cap=16):
    """Largest divisor of n that is <= cap (keeps VMEM blocks modest)."""
    bt = 1
    for d in range(1, min(n, cap) + 1):
        if n % d == 0:
            bt = d
    return bt


def attention_forward(v, q, wv, wq, bq, wx, bx):
    """v: (N, Cv, H, W) f32; q: (N, Cq) f32.
    wv: (M, Cv) [= Conv2d(M, Cv, 1, bias=False) weight squeezed]
    wq: (M, Cq), bq: (M,)   [= q_lin]
    wx: (G, M),  bx: (G,)   [= Conv2d(G, M, 1) weight squeezed + bias]
    Returns (N, G, H, W) f32.
    """
    N, Cv, H, W = v.shape
    M, Cq = wq.shape
    G = wx.shape[0]
    HW = H * W
    BT = _pick_batch_tile(N)

    # Free reshapes only (no HBM transposes of activations).
    v_flat = v.reshape(N, Cv, HW)
    q_rows = q.reshape(N, 1, Cq)
    bq_col = bq.reshape(M, 1)
    bx_col = bx.reshape(G, 1)

    out = pl.pallas_call(
        attention_kernel,
        out_shape=jax.ShapeDtypeStruct((N, G, HW), jnp.float32),
        grid_spec=pltpu.PrefetchScalarGridSpec(
            num_scalar_prefetch=0,
            grid=(N // BT,),
            in_specs=[
                pl.BlockSpec((BT, Cv, HW), lambda n: (n, 0, 0)),   # v (batch tile)
                pl.BlockSpec((BT, 1, Cq), lambda n: (n, 0, 0)),    # q (batch tile)
                pl.BlockSpec((M, Cv), lambda n: (0, 0)),           # v_conv weight
                pl.BlockSpec((M, Cq), lambda n: (0, 0)),           # q_lin weight
                pl.BlockSpec((M, 1), lambda n: (0, 0)),            # q_lin bias
                pl.BlockSpec((G, M), lambda n: (0, 0)),            # x_conv weight
                pl.BlockSpec((G, 1), lambda n: (0, 0)),            # x_conv bias
            ],
            out_specs=pl.BlockSpec((BT, G, HW), lambda n: (n, 0, 0)),
        ),
        compiler_params=pltpu.CompilerParams(
            dimension_semantics=("parallel",)),
    )(v_flat, q_rows, wv, wq, bq_col, wx, bx_col)

    return out.reshape(N, G, H, W)


def ref_forward(v, q, wv, wq, bq, wx, bx):
    """Pure-JAX reference of the PyTorch Attention.forward (drop=0)."""
    hi = jax.lax.Precision.HIGHEST
    v_feat = jnp.einsum('nchw,mc->nmhw', v, wv, precision=hi)
    q_feat = jnp.einsum('nc,mc->nm', q, wq, precision=hi) + bq            # (N, M)
    q_tiled = q_feat[:, :, None, None]                                    # tile_2d_over_nd
    x = -(v_feat - q_tiled) ** 2 + jax.nn.relu(v_feat + q_tiled)          # Fusion
    out = jnp.einsum('nmhw,gm->nghw', x, wx, precision=hi) + bx[None, :, None, None]
    return out


if __name__ == "__main__":
    # batch=2, v_features=32, q_features=32, mid_features=32, glimpses=4, 16x16 spatial
    N, Cv, Cq, M, G, H, W = 2, 32, 32, 32, 4, 16, 16

    keys = jax.random.split(jax.random.PRNGKey(0), 7)
    v = jax.random.normal(keys[0], (N, Cv, H, W), jnp.float32)
    q = jax.random.normal(keys[1], (N, Cq), jnp.float32)
    wv = jax.random.normal(keys[2], (M, Cv), jnp.float32) / jnp.sqrt(Cv)
    wq = jax.random.normal(keys[3], (M, Cq), jnp.float32) / jnp.sqrt(Cq)
    bq = jax.random.normal(keys[4], (M,), jnp.float32) * 0.1
    wx = jax.random.normal(keys[5], (G, M), jnp.float32) / jnp.sqrt(M)
    bx = jax.random.normal(keys[6], (G,), jnp.float32) * 0.1

    out = jax.block_until_ready(attention_forward(v, q, wv, wq, bq, wx, bx))
    ref = jax.block_until_ready(ref_forward(v, q, wv, wq, bq, wx, bx))

    assert out.shape == (N, G, H, W)
    assert jnp.allclose(out, ref, atol=1e-3, rtol=1e-3), float(jnp.max(jnp.abs(out - ref)))
    print("KERNEL_OK")
</pallas_src>

<mosaic_0001>
module attributes {stable_mosaic.version = 11 : i64} {
  func.func @attention_kernel(%arg0: i32, %arg1: memref<2x32x256xf32, #tpu.memory_space<vmem>>, %arg2: memref<2x1x32xf32, #tpu.memory_space<vmem>>, %arg3: memref<32x32xf32, #tpu.memory_space<vmem>>, %arg4: memref<32x32xf32, #tpu.memory_space<vmem>>, %arg5: memref<32x1xf32, #tpu.memory_space<vmem>>, %arg6: memref<4x32xf32, #tpu.memory_space<vmem>>, %arg7: memref<4x1xf32, #tpu.memory_space<vmem>>, %arg8: memref<2x4x256xf32, #tpu.memory_space<vmem>>) attributes {dimension_semantics = [#tpu.dimension_semantics<parallel>], iteration_bounds = array<i64: 1>, scalar_prefetch = 0 : i64, scratch_operands = 0 : i64, tpu.core_type = #tpu.core_type<tc>, window_params = [{transform_indices = @transform_0, window_bounds = array<i64: 2, 32, 256>}, {transform_indices = @transform_1, window_bounds = array<i64: 2, 1, 32>}, {pipeline_mode = #tpu.pipeline_mode<synchronous>, transform_indices = @transform_2, window_bounds = array<i64: 32, 32>}, {pipeline_mode = #tpu.pipeline_mode<synchronous>, transform_indices = @transform_3, window_bounds = array<i64: 32, 32>}, {pipeline_mode = #tpu.pipeline_mode<synchronous>, transform_indices = @transform_4, window_bounds = array<i64: 32, 1>}, {pipeline_mode = #tpu.pipeline_mode<synchronous>, transform_indices = @transform_5, window_bounds = array<i64: 4, 32>}, {pipeline_mode = #tpu.pipeline_mode<synchronous>, transform_indices = @transform_6, window_bounds = array<i64: 4, 1>}, {transform_indices = @transform_7, window_bounds = array<i64: 2, 4, 256>}]} {
    %c0 = arith.constant 0 : index
    %c0_0 = arith.constant 0 : index
    %0 = vector.load %arg3[%c0, %c0_0] : memref<32x32xf32, #tpu.memory_space<vmem>>, vector<32x32xf32>
    %c0_1 = arith.constant 0 : index
    %c0_2 = arith.constant 0 : index
    %1 = vector.load %arg4[%c0_1, %c0_2] : memref<32x32xf32, #tpu.memory_space<vmem>>, vector<32x32xf32>
    %c0_3 = arith.constant 0 : index
    %c0_4 = arith.constant 0 : index
    %2 = vector.load %arg5[%c0_3, %c0_4] : memref<32x1xf32, #tpu.memory_space<vmem>>, vector<32x1xf32>
    %c0_5 = arith.constant 0 : index
    %c0_6 = arith.constant 0 : index
    %3 = vector.load %arg6[%c0_5, %c0_6] : memref<4x32xf32, #tpu.memory_space<vmem>>, vector<4x32xf32>
    %c0_7 = arith.constant 0 : index
    %c0_8 = arith.constant 0 : index
    %4 = vector.load %arg7[%c0_7, %c0_8] : memref<4x1xf32, #tpu.memory_space<vmem>>, vector<4x1xf32>
    %c0_9 = arith.constant 0 : index
    %c0_10 = arith.constant 0 : index
    %c0_11 = arith.constant 0 : index
    %5 = vector.load %arg1[%c0_9, %c0_10, %c0_11] : memref<2x32x256xf32, #tpu.memory_space<vmem>>, vector<1x32x256xf32>
    %6 = vector.shape_cast %5 : vector<1x32x256xf32> to vector<32x256xf32>
    %cst = arith.constant dense<0.000000e+00> : vector<32x256xf32>
    %7 = tpu.matmul %0, %6, %cst {dimension_numbers = #tpu.dot_dimension_numbers<[1], [0], [0], [1], [0, 0, 1, 1], [], []>} : vector<32x32xf32>, vector<32x256xf32>, vector<32x256xf32> -> vector<32x256xf32>
    %c0_12 = arith.constant 0 : index
    %c0_13 = arith.constant 0 : index
    %c0_14 = arith.constant 0 : index
    %8 = vector.load %arg2[%c0_12, %c0_13, %c0_14] : memref<2x1x32xf32, #tpu.memory_space<vmem>>, vector<1x1x32xf32>
    %9 = vector.shape_cast %8 : vector<1x1x32xf32> to vector<1x32xf32>
    %10 = vector.broadcast %9 : vector<1x32xf32> to vector<32x32xf32>
    %11 = arith.mulf %1, %10 : vector<32x32xf32>
    %cst_15 = arith.constant dense<0.000000e+00> : vector<32xf32>
    %12 = vector.multi_reduction <add>, %11, %cst_15 [1] : vector<32x32xf32> to vector<32xf32>
    %13 = vector.shape_cast %12 : vector<32xf32> to vector<32x1xf32>
    %14 = arith.addf %13, %2 : vector<32x1xf32>
    %15 = vector.broadcast %14 : vector<32x1xf32> to vector<32x256xf32>
    %16 = arith.subf %7, %15 : vector<32x256xf32>
    %17 = vector.broadcast %14 : vector<32x1xf32> to vector<32x256xf32>
    %18 = arith.addf %7, %17 : vector<32x256xf32>
    %cst_16 = arith.constant 0.000000e+00 : f32
    %19 = vector.broadcast %cst_16 : f32 to vector<32x256xf32>
    %20 = arith.maximumf %18, %19 : vector<32x256xf32>
    %21 = arith.mulf %16, %16 : vector<32x256xf32>
    %22 = arith.subf %20, %21 : vector<32x256xf32>
    %cst_17 = arith.constant dense<0.000000e+00> : vector<4x256xf32>
    %23 = tpu.matmul %3, %22, %cst_17 {dimension_numbers = #tpu.dot_dimension_numbers<[1], [0], [0], [1], [0, 0, 1, 1], [], []>} : vector<4x32xf32>, vector<32x256xf32>, vector<4x256xf32> -> vector<4x256xf32>
    %24 = vector.broadcast %4 : vector<4x1xf32> to vector<4x256xf32>
    %25 = arith.addf %23, %24 : vector<4x256xf32>
    %c0_18 = arith.constant 0 : index
    %c0_19 = arith.constant 0 : index
    %c0_20 = arith.constant 0 : index
    %26 = vector.load %arg8[%c0_18, %c0_19, %c0_20] : memref<2x4x256xf32, #tpu.memory_space<vmem>>, vector<1x4x256xf32>
    %27 = vector.shape_cast %26 : vector<1x4x256xf32> to vector<4x256xf32>
    %28 = vector.shape_cast %25 : vector<4x256xf32> to vector<1x4x256xf32>
    tpu.vector_store %arg8[%c0_18, %c0_19, %c0_20], %28 {strides = array<i32>} : memref<2x4x256xf32, #tpu.memory_space<vmem>>, vector<1x4x256xf32>,
    %c1 = arith.constant 1 : index
    %c0_21 = arith.constant 0 : index
    %c0_22 = arith.constant 0 : index
    %29 = vector.load %arg1[%c1, %c0_21, %c0_22] : memref<2x32x256xf32, #tpu.memory_space<vmem>>, vector<1x32x256xf32>
    %30 = vector.shape_cast %29 : vector<1x32x256xf32> to vector<32x256xf32>
    %cst_23 = arith.constant dense<0.000000e+00> : vector<32x256xf32>
    %31 = tpu.matmul %0, %30, %cst_23 {dimension_numbers = #tpu.dot_dimension_numbers<[1], [0], [0], [1], [0, 0, 1, 1], [], []>} : vector<32x32xf32>, vector<32x256xf32>, vector<32x256xf32> -> vector<32x256xf32>
    %c1_24 = arith.constant 1 : index
    %c0_25 = arith.constant 0 : index
    %c0_26 = arith.constant 0 : index
    %32 = vector.load %arg2[%c1_24, %c0_25, %c0_26] : memref<2x1x32xf32, #tpu.memory_space<vmem>>, vector<1x1x32xf32>
    %33 = vector.shape_cast %32 : vector<1x1x32xf32> to vector<1x32xf32>
    %34 = vector.broadcast %33 : vector<1x32xf32> to vector<32x32xf32>
    %35 = arith.mulf %1, %34 : vector<32x32xf32>
    %cst_27 = arith.constant dense<0.000000e+00> : vector<32xf32>
    %36 = vector.multi_reduction <add>, %35, %cst_27 [1] : vector<32x32xf32> to vector<32xf32>
    %37 = vector.shape_cast %36 : vector<32xf32> to vector<32x1xf32>
    %38 = arith.addf %37, %2 : vector<32x1xf32>
    %39 = vector.broadcast %38 : vector<32x1xf32> to vector<32x256xf32>
    %40 = arith.subf %31, %39 : vector<32x256xf32>
    %41 = vector.broadcast %38 : vector<32x1xf32> to vector<32x256xf32>
    %42 = arith.addf %31, %41 : vector<32x256xf32>
    %cst_28 = arith.constant 0.000000e+00 : f32
    %43 = vector.broadcast %cst_28 : f32 to vector<32x256xf32>
    %44 = arith.maximumf %42, %43 : vector<32x256xf32>
    %45 = arith.mulf %40, %40 : vector<32x256xf32>
    %46 = arith.subf %44, %45 : vector<32x256xf32>
    %cst_29 = arith.constant dense<0.000000e+00> : vector<4x256xf32>
    %47 = tpu.matmul %3, %46, %cst_29 {dimension_numbers = #tpu.dot_dimension_numbers<[1], [0], [0], [1], [0, 0, 1, 1], [], []>} : vector<4x32xf32>, vector<32x256xf32>, vector<4x256xf32> -> vector<4x256xf32>
    %48 = vector.broadcast %4 : vector<4x1xf32> to vector<4x256xf32>
    %49 = arith.addf %47, %48 : vector<4x256xf32>
    %c1_30 = arith.constant 1 : index
    %c0_31 = arith.constant 0 : index
    %c0_32 = arith.constant 0 : index
    %50 = vector.load %arg8[%c1_30, %c0_31, %c0_32] : memref<2x4x256xf32, #tpu.memory_space<vmem>>, vector<1x4x256xf32>
    %51 = vector.shape_cast %50 : vector<1x4x256xf32> to vector<4x256xf32>
    %52 = vector.shape_cast %49 : vector<4x256xf32> to vector<1x4x256xf32>
    tpu.vector_store %arg8[%c1_30, %c0_31, %c0_32], %52 {strides = array<i32>} : memref<2x4x256xf32, #tpu.memory_space<vmem>>, vector<1x4x256xf32>,
    return
  }
  func.func @transform_0(%arg0: i32) -> (i32, i32, i32) {
    %c0_i32 = arith.constant 0 : i32
    %c0_i32_0 = arith.constant 0 : i32
    %c0_i32_1 = arith.constant 0 : i32
    return %arg0, %c0_i32, %c0_i32_0 : i32, i32, i32
  }
  func.func @transform_1(%arg0: i32) -> (i32, i32, i32) {
    %c0_i32 = arith.constant 0 : i32
    %c0_i32_0 = arith.constant 0 : i32
    %c0_i32_1 = arith.constant 0 : i32
    return %arg0, %c0_i32, %c0_i32_0 : i32, i32, i32
  }
  func.func @transform_2(%arg0: i32) -> (i32, i32) {
    %c0_i32 = arith.constant 0 : i32
    %c0_i32_0 = arith.constant 0 : i32
    %c0_i32_1 = arith.constant 0 : i32
    return %c0_i32, %c0_i32_0 : i32, i32
  }
  func.func @transform_3(%arg0: i32) -> (i32, i32) {
    %c0_i32 = arith.constant 0 : i32
    %c0_i32_0 = arith.constant 0 : i32
    %c0_i32_1 = arith.constant 0 : i32
    return %c0_i32, %c0_i32_0 : i32, i32
  }
  func.func @transform_4(%arg0: i32) -> (i32, i32) {
    %c0_i32 = arith.constant 0 : i32
    %c0_i32_0 = arith.constant 0 : i32
    %c0_i32_1 = arith.constant 0 : i32
    return %c0_i32, %c0_i32_0 : i32, i32
  }
  func.func @transform_5(%arg0: i32) -> (i32, i32) {
    %c0_i32 = arith.constant 0 : i32
    %c0_i32_0 = arith.constant 0 : i32
    %c0_i32_1 = arith.constant 0 : i32
    return %c0_i32, %c0_i32_0 : i32, i32
  }
  func.func @transform_6(%arg0: i32) -> (i32, i32) {
    %c0_i32 = arith.constant 0 : i32
    %c0_i32_0 = arith.constant 0 : i32
    %c0_i32_1 = arith.constant 0 : i32
    return %c0_i32, %c0_i32_0 : i32, i32
  }
  func.func @transform_7(%arg0: i32) -> (i32, i32, i32) {
    %c0_i32 = arith.constant 0 : i32
    %c0_i32_0 = arith.constant 0 : i32
    %c0_i32_1 = arith.constant 0 : i32
    return %arg0, %c0_i32, %c0_i32_0 : i32, i32, i32
  }
}

</mosaic_0001>

<bundles_post_ra>
// kernel: tpu_custom_call.1
= control target key start
LH: loop header
LB: loop body
LE: loop exit
PB: predicated region body
PF: predicated region fallthrough
CT: control target
= control target key end

     0   :  { %12 = vsyncpa [#allocation3], 0  ;;  %s858_s0 = inlined_call_operand.hbm [shape: f32[2,32,256], index: 0, kind: input, shape index: {}]   ;;  %s859_s1 = inlined_call_operand.hbm [shape: f32[2,1,32], index: 1, kind: input, shape index: {}]   ;;  %s860_s2 = inlined_call_operand.vmem [shape: f32[32,32], index: 2, kind: input, shape index: {}]   ;;  %s861_s3 = inlined_call_operand.hbm [shape: f32[32,32], index: 3, kind: input, shape index: {}]   ;;  %s862_s4 = inlined_call_operand.vmem [shape: f32[32,1], index: 4, kind: input, shape index: {}]   ;;  %s863_s5 = inlined_call_operand.vmem [shape: f32[4,32], index: 5, kind: input, shape index: {}]   ;;  %s864_s6 = inlined_call_operand.vmem [shape: f32[4,1], index: 6, kind: input, shape index: {}]   ;;  %s865_s7 = inlined_call_operand.hbm [shape: f32[2,4,256], index: 7, kind: output, shape index: {}]  }
   0x1   :  { %13 = vsyncpa [#allocation6], 0  ;;  %s32_s26 = sshll.u32 %s859_s1, 4  ;;  %s33_s26 = int_to_ptr.hbm [resolvable:$true] %s32_s26 }
   0x2   :  { %14 = vsyncpa [#allocation4], 0  ;;  %s662_s27 = smov [#allocation5]   ;;  %s19_s8 = sshll.u32 %s858_s0, 4  ;;  %s20_s8 = int_to_ptr.hbm [resolvable:$true] %s19_s8 }
   0x3   :  { %s34_s28 = sshll.u32 %s662_s27, 4  ;;  %s663_s9 = smov 16   ;;  %s35_s28 = int_to_ptr.vmem [resolvable:$true] %s34_s28 }
   0x4   :  { %s664_s10 = smov 1   ;;  %s665_s11 = smov [#allocation2]  }
   0x5   :  { %40 = dma.hbm_to_vmem [thread:$0]  %s33_s26, 32, %s35_s28, [#allocation6], %s663_s9, %s663_s9, %s664_s10  }
   0x6   :  { %s21_s12 = sshll.u32 %s665_s11, 4  ;;  %s47_s1 = sshll.u32 %s861_s3, 4  ;;  %s22_s12 = int_to_ptr.vmem [resolvable:$true] %s21_s12  ;;  %s48_s1 = int_to_ptr.hbm [resolvable:$true] %s47_s1 }
   0x7   :  { %s666_s15 = smov 256   ;;  %s667_s16 = smov [#allocation7]  }
   0x8   :  { %27 = dma.hbm_to_vmem [thread:$0]  %s20_s8, 2048, %s22_s12, [#allocation3], %s666_s15, %s666_s15, %s663_s9  }
   0x9   :  { %s49_s17 = sshll.u32 %s667_s16, 4  ;;  %s668_s18 = smov 128   ;;  %s50_s17 = int_to_ptr.vmem [resolvable:$true] %s49_s17 }
   0xa   :  { %s669_s19 = smov 8  }
   0xb   :  { %55 = dma.hbm_to_vmem [thread:$0]  %s48_s1, 512, %s50_s17, [#allocation6], %s668_s18, %s668_s18, %s669_s19  }
   0xc   :  { %656 = dma.done.wait [#allocation3], 2048  }
   0xd   :  { %657 = vsyncadd [#allocation3], 4294965248 }
   0xe   :  { %658 = dma.done.wait [#allocation6], 544  }
   0xf   :  { %659 = vsyncadd [#allocation6], 4294966752  ;;  %v724_v0 = vld [vmem:[#allocation7 + $0x18] sm:$0xff]  ;;  %vm96_vm0 = vcmask 261120   ;;  %v726_v2 = vld [vmem:[#allocation7 + $0x8] sm:$0xff]  ;;  %v670_v25 = vmov 0  }
  0x10   :  { %v558_v1 = vld [vmem:[#allocation5] ss:$0 sm:$0xff]  ;;  %v730_v5 = vld [vmem:[#allocation7 + $0x10] sm:$0xff]  ;;  %v732_v8 = vld [vmem:[#allocation7] sm:$0xff]  ;;  %556 = vset.pattern.permute.xlu0 %v670_v25  ;;  %555 = vset.pattern.permute.xlu2 %v670_v25  ;;  %vm302_vm1 = vcmask 1043456   ;;  %s511_s1 = sshll.u32 %s865_s7, 4  ;;  %s512_s1 = int_to_ptr.hbm [resolvable:$true] %s511_s1 }
  0x11   :  { %v174_v3 = vmul.f32 %v558_v1, %v724_v0  ;;  %v172_v4 = vmul.f32 %v558_v1, %v726_v2  ;;  %v95_v6 = vld [vmem:[#allocation2 + $0x38] sm:$0xff]  ;;  %v94_v7 = vld [vmem:[#allocation2 + $0x30] sm:$0xff]  ;;  %v93_v9 = vld [vmem:[#allocation2 + $0x28] sm:$0xff]  ;;  %v173_v15 = vmul.f32 %v558_v1, %v730_v5  ;;  %v171_v16 = vmul.f32 %v558_v1, %v732_v8  ;;  %557 = vset.pattern.permute.xlu1 %v670_v25 }
  0x12   :  { %150 = vmatpush.msra.mxu1 %v95_v6  ;;  %121 = vmatpush.msra.mxu0 %v94_v7  ;;  %v92_v10 = vld [vmem:[#allocation2 + $0x20] sm:$0xff]  ;;  %v91_v13 = vld [vmem:[#allocation2 + $0x18] sm:$0xff]  ;;  %v90_v14 = vld [vmem:[#allocation2 + $0x10] sm:$0xff] }
  0x13   :  { %v184_v11 = vsel %vm96_vm0, %v174_v3, 0.0  ;;  %v178_v12 = vsel %vm96_vm0, %v172_v4, 0.0  ;;  %v89_v17 = vld [vmem:[#allocation2 + $0x8] sm:$0xff]  ;;  %v88_v18 = vld [vmem:[#allocation2] sm:$0xff]  ;;  %v181_v20 = vsel %vm96_vm0, %v173_v15, 0.0  ;;  %v175_v21 = vsel %vm96_vm0, %v171_v16, 0.0 }
  0x14   :  { %185 = vadd.xlane.f32.xlu0 %v184_v11  ;;  %179 = vadd.xlane.f32.xlu1 %v178_v12  ;;  %v741_v19 = vld [vmem:[%s860_s2] sm:$0xff]  ;;  %v752_v22 = vld [vmem:[%s860_s2 + $0x8] sm:$0xff]  ;;  %v761_v23 = vld [vmem:[%s860_s2 + $0x10] sm:$0xff] }
  0x15   :  { %151 = vmatpush.msra.mxu1 %v93_v9  ;;  %122 = vmatpush.msra.mxu0 %v92_v10  ;;  %v770_v24 = vld [vmem:[%s860_s2 + $0x18] sm:$0xff]  ;;  %v784_v27 = vld [vmem:[%s862_s4 + $0x8] sm:$0xff]  ;;  %v791_v32 = vld [vmem:[%s862_s4 + $0x10] sm:$0xff] }
  0x16   :  { %v779_v26 = vld [vmem:[%s862_s4 + $0x18] sm:$0xff]  ;;  %v796_v33 = vld [vmem:[%s862_s4] sm:$0xff] }
  0x17   :  { %152 = vmatpush.msra.mxu1 %v91_v13  ;;  %123 = vmatpush.msra.mxu0 %v90_v14  ;;  %v559_v38 = vld [vmem:[#allocation5 + $0x1] ss:$0 sm:$0xff] }
  0x18   :  { %v379_v39 = vmul.f32 %v559_v38, %v726_v2  ;;  %v381_v41 = vmul.f32 %v559_v38, %v724_v0  ;;  %v380_v42 = vmul.f32 %v559_v38, %v730_v5  ;;  %v378_v45 = vmul.f32 %v559_v38, %v732_v8  ;;  %v87_v49 = vld [vmem:[%s864_s6] sm:$0xf] }
  0x19   :  { %153 = vmatpush.msra.mxu1 %v89_v17  ;;  %124 = vmatpush.msra.mxu0 %v88_v18 }
  0x1a   :  { %529 = vmatmul.msk.f32.vlgmr.msra.gmra.mxu1 %vm96_vm0, %v741_v19  ;;  %525 = vmatmul.msk.f32.vlgmr.msra.gmra.mxu0 %vm96_vm0, %v741_v19  ;;  %v385_v40 = vsel %vm96_vm0, %v379_v39, 0.0  ;;  %v391_v43 = vsel %vm96_vm0, %v381_v41, 0.0  ;;  %v388_v44 = vsel %vm96_vm0, %v380_v42, 0.0  ;;  %v382_v46 = vsel %vm96_vm0, %v378_v45, 0.0  ;;  %v313_v45 = vld [vmem:[#allocation2 + $0x70] sm:$0xff] }
  0x1c   :  { %182 = vadd.xlane.f32.xlu0 %v181_v20  ;;  %176 = vadd.xlane.f32.xlu1 %v175_v21 }
  0x22   :  { %530 = vmatmul.msk.f32.gmra.mxu1 %vm96_vm0, %v752_v22  ;;  %526 = vmatmul.msk.f32.gmra.mxu0 %vm96_vm0, %v752_v22 }
  0x2a   :  { %531 = vmatmul.msk.f32.gmra.mxu1 %vm96_vm0, %v761_v23  ;;  %527 = vmatmul.msk.f32.gmra.mxu0 %vm96_vm0, %v761_v23 }
  0x32   :  { %532 = vmatmul.msk.f32.gmra.mxu1 %vm96_vm0, %v770_v24  ;;  %528 = vmatmul.msk.f32.gmra.mxu0 %vm96_vm0, %v770_v24 }
  0x87   :  { %v186_v28 = vpop.xlane.xlu0 %185  ;;  %v180_v29 = vpop.xlane.xlu1 %179 }
  0x88   :  { %v190_v30 = vadd.f32 %v186_v28, %v779_v26  ;;  %v188_v31 = vadd.f32 %v180_v29, %v784_v27 }
  0x8a   :  { %208 = vperm.xlu2 %555, %v190_v30   ;;  %198 = vperm.xlu0 %556, %v188_v31  }
  0x8f   :  { %v183_v34 = vpop.xlane.xlu0 %182  ;;  %v177_v35 = vpop.xlane.xlu1 %176 }
  0x90   :  { %v189_v36 = vadd.f32 %v183_v34, %v791_v32  ;;  %v187_v37 = vadd.f32 %v177_v35, %v796_v33 }
  0x92   :  { %203 = vperm.xlu2 %555, %v189_v36   ;;  %193 = vperm.xlu1 %557, %v187_v37  }
  0x97   :  { %v155_v47 = vpop.f32.mrf.mxu1  ;;  %v126_v48 = vpop.f32.mrf.mxu0 }
  0x9f   :  { %v158_v50 = vpop.f32.mrf.mxu1  ;;  %v129_v51 = vpop.f32.mrf.mxu0 }
  0xa7   :  { %v161_v52 = vpop.f32.mrf.mxu1  ;;  %v132_v53 = vpop.f32.mrf.mxu0 }
  0xaf   :  { %v164_v54 = vpop.f32.mrf.mxu1  ;;  %v135_v55 = vpop.f32.mrf.mxu0 }
  0xb4   :  { %386 = vadd.xlane.f32.xlu0 %v385_v40 }
  0xbb   :  { %392 = vadd.xlane.f32.xlu2 %v391_v43 }
  0xbc   :  { %389 = vadd.xlane.f32.xlu1 %v388_v44  ;;  %v814_v44 = vld [vmem:[%s863_s5] sm:$0xf]  ;;  %s671_s5 = smov [#allocation8]  }
  0xbd   :  { %s509_s12 = sshll.u32 %s671_s5, 4  ;;  %s510_s12 = int_to_ptr.vmem [resolvable:$true] %s509_s12 }
  0xc3   :  { %383 = vadd.xlane.f32.xlu2 %v382_v46  ;;  %v314_v46 = vld [vmem:[#allocation2 + $0x78] sm:$0xff] }
  0xc8   :  { %253 = vperm.xlu0 %556, %v87_v49   ;;  %v309_v49 = vld [vmem:[#allocation2 + $0x50] sm:$0xff] }
  0xe4   :  { %v209_v56 = vpop.permute.xlu2 %208 }
  0xe5   :  { %v218_v57 = vsub.f32 %v164_v54, %v209_v56  ;;  %v226_v58 = vadd.f32 %v209_v56, %v164_v54  ;;  %v217_v59 = vsub.f32 %v135_v55, %v209_v56  ;;  %v225_v60 = vadd.f32 %v209_v56, %v135_v55 }
  0xe7   :  { %v234_v61 = vmax.f32 %v226_v58, 0.0  ;;  %v242_v62 = vmul.f32 %v218_v57, %v218_v57  ;;  %v233_v63 = vmax.f32 %v225_v60, 0.0  ;;  %v241_v0 = vmul.f32 %v217_v59, %v217_v59 }
  0xe9   :  { %v250_v1 = vsub.f32 %v234_v61, %v242_v62  ;;  %v249_v2 = vsub.f32 %v233_v63, %v241_v0 }
  0xeb   :  { %291 = vmatpush.msra.mxu3 %v250_v1  ;;  %271 = vmatpush.msra.mxu2 %v249_v2 }
  0xec   :  { %v204_v3 = vpop.permute.xlu2 %203 }
  0xed   :  { %v216_v4 = vsub.f32 %v161_v52, %v204_v3  ;;  %v224_v5 = vadd.f32 %v204_v3, %v161_v52  ;;  %v215_v6 = vsub.f32 %v132_v53, %v204_v3  ;;  %v223_v7 = vadd.f32 %v204_v3, %v132_v53  ;;  %v308_v52 = vld [vmem:[#allocation2 + $0x48] sm:$0xff] }
  0xef   :  { %v232_v8 = vmax.f32 %v224_v5, 0.0  ;;  %v240_v9 = vmul.f32 %v216_v4, %v216_v4  ;;  %v231_v10 = vmax.f32 %v223_v7, 0.0  ;;  %v239_v11 = vmul.f32 %v215_v6, %v215_v6 }
  0xf1   :  { %v248_v12 = vsub.f32 %v232_v8, %v240_v9  ;;  %v247_v13 = vsub.f32 %v231_v10, %v239_v11 }
  0xf3   :  { %292 = vmatpush.msra.mxu3 %v248_v12  ;;  %272 = vmatpush.msra.mxu2 %v247_v13 }
  0xfc   :  { %v199_v14 = vpop.permute.xlu0 %198 }
  0xfd   :  { %v213_v15 = vsub.f32 %v129_v51, %v199_v14  ;;  %v221_v16 = vadd.f32 %v199_v14, %v129_v51  ;;  %v214_v17 = vsub.f32 %v158_v50, %v199_v14  ;;  %v222_v18 = vadd.f32 %v199_v14, %v158_v50  ;;  %v310_v50 = vld [vmem:[#allocation2 + $0x58] sm:$0xff]  ;;  %v307_v51 = vld [vmem:[#allocation2 + $0x40] sm:$0xff] }
  0xff   :  { %v229_v20 = vmax.f32 %v221_v16, 0.0  ;;  %v237_v21 = vmul.f32 %v213_v15, %v213_v15  ;;  %v230_v25 = vmax.f32 %v222_v18, 0.0  ;;  %v238_v28 = vmul.f32 %v214_v17, %v214_v17 }
 0x101   :  { %v245_v29 = vsub.f32 %v229_v20, %v237_v21  ;;  %v246_v30 = vsub.f32 %v230_v25, %v238_v28 }
 0x103   :  { %273 = vmatpush.msra.mxu2 %v245_v29  ;;  %293 = vmatpush.msra.mxu3 %v246_v30 }
 0x104   :  { %v194_v31 = vpop.permute.xlu1 %193 }
 0x105   :  { %v211_v34 = vsub.f32 %v126_v48, %v194_v31  ;;  %v219_v35 = vadd.f32 %v194_v31, %v126_v48  ;;  %v212_v36 = vsub.f32 %v155_v47, %v194_v31  ;;  %v220_v37 = vadd.f32 %v194_v31, %v155_v47  ;;  %v311_v47 = vld [vmem:[#allocation2 + $0x60] sm:$0xff]  ;;  %v312_v48 = vld [vmem:[#allocation2 + $0x68] sm:$0xff] }
 0x107   :  { %v227_v38 = vmax.f32 %v219_v35, 0.0  ;;  %v235_v39 = vmul.f32 %v211_v34, %v211_v34  ;;  %v228_v40 = vmax.f32 %v220_v37, 0.0  ;;  %v236_v41 = vmul.f32 %v212_v36, %v212_v36 }
 0x109   :  { %v243_v42 = vsub.f32 %v227_v38, %v235_v39  ;;  %v244_v43 = vsub.f32 %v228_v40, %v236_v41 }
 0x10b   :  { %274 = vmatpush.msra.mxu2 %v243_v42  ;;  %294 = vmatpush.msra.mxu3 %v244_v43 }
 0x10c   :  { %533 = vmatmul.msk.f32.vlgmr.msra.gmra.mxu2 %vm96_vm0, %v814_v44  ;;  %534 = vmatmul.msk.f32.vlgmr.msra.gmra.mxu3 %vm96_vm0, %v814_v44 }
 0x10d   :  { %327 = vmatpush.msrb.mxu2 %v313_v45  ;;  %356 = vmatpush.msrb.mxu3 %v314_v46 }
 0x10f   :  { %328 = vmatpush.msrb.mxu2 %v311_v47  ;;  %357 = vmatpush.msrb.mxu3 %v312_v48 }
 0x111   :  { %329 = vmatpush.msrb.mxu2 %v309_v49  ;;  %358 = vmatpush.msrb.mxu3 %v310_v50 }
 0x113   :  { %330 = vmatpush.msrb.mxu2 %v307_v51  ;;  %359 = vmatpush.msrb.mxu3 %v308_v52 }
 0x114   :  { %535 = vmatmul.msk.f32.vlgmr.msrb.gmra.mxu2 %vm96_vm0, %v741_v19  ;;  %539 = vmatmul.msk.f32.vlgmr.msrb.gmra.mxu3 %vm96_vm0, %v741_v19 }
 0x11c   :  { %536 = vmatmul.msk.f32.gmra.mxu2 %vm96_vm0, %v752_v22  ;;  %540 = vmatmul.msk.f32.gmra.mxu3 %vm96_vm0, %v752_v22 }
 0x124   :  { %537 = vmatmul.msk.f32.gmra.mxu2 %vm96_vm0, %v761_v23  ;;  %541 = vmatmul.msk.f32.gmra.mxu3 %vm96_vm0, %v761_v23 }
 0x127   :  { %v387_v22 = vpop.xlane.xlu0 %386 }
 0x128   :  { %v395_v56 = vadd.f32 %v387_v22, %v784_v27 }
 0x12c   :  { %538 = vmatmul.msk.f32.gmra.mxu2 %vm96_vm0, %v770_v24  ;;  %542 = vmatmul.msk.f32.gmra.mxu3 %vm96_vm0, %v770_v24 }
 0x12e   :  { %v393_v53 = vpop.xlane.xlu2 %392 }
 0x12f   :  { %v397_v19 = vadd.f32 %v393_v53, %v779_v26  ;;  %v390_v54 = vpop.xlane.xlu1 %389 }
 0x130   :  { %v396_v55 = vadd.f32 %v390_v54, %v791_v32 }
 0x131   :  { %415 = vperm.xlu2 %555, %v397_v19  }
 0x132   :  { %410 = vperm.xlu1 %557, %v396_v55  }
 0x136   :  { %v384_v57 = vpop.xlane.xlu2 %383 }
 0x137   :  { %v394_v23 = vadd.f32 %v384_v57, %v796_v33 }
 0x139   :  { %405 = vperm.xlu2 %555, %v395_v56  }
 0x13a   :  { %v840_v58 = vpop.permute.xlu0 %253 }
 0x141   :  { %400 = vperm.xlu2 %555, %v394_v23  }
 0x18b   :  { %v416_v62 = vpop.permute.xlu2 %415 }
 0x18f   :  { %v276_v59 = vpop.f32.mrf.mxu2  ;;  %v296_v24 = vpop.f32.mrf.mxu3 }
 0x190   :  { %v297_v60 = vadd.f32 %v296_v24, %v840_v58  ;;  %v277_v26 = vadd.f32 %v276_v59, %v840_v58 }
 0x192   :  { %v301_v32 = vrot.slane %v297_v60, 4 }
 0x193   :  { %v406_v33 = vpop.permute.xlu2 %405 }
 0x194   :  { %v303_v61 = vsel %vm302_vm1, %v277_v26, %v301_v32 }
 0x195   :  { %305 = vst [vmem:[#allocation8] sm:$0xff] %v303_v61 }
 0x197   :  { %v332_v27 = vpop.f32.mrf.mxu2  ;;  %v361_v63 = vpop.f32.mrf.mxu3 }
 0x19b   :  { %v401_v4 = vpop.permute.xlu2 %400 }
 0x19c   :  { %v418_v10 = vsub.f32 %v332_v27, %v401_v4  ;;  %v419_v11 = vsub.f32 %v361_v63, %v401_v4  ;;  %v426_v12 = vadd.f32 %v401_v4, %v332_v27  ;;  %v427_v13 = vadd.f32 %v401_v4, %v361_v63 }
 0x19e   :  { %v434_v47 = vmax.f32 %v426_v12, 0.0  ;;  %v442_v48 = vmul.f32 %v418_v10, %v418_v10  ;;  %v435_v51 = vmax.f32 %v427_v13, 0.0  ;;  %v443_v52 = vmul.f32 %v419_v11, %v419_v11 }
 0x19f   :  { %v335_v0 = vpop.f32.mrf.mxu2  ;;  %v364_v1 = vpop.f32.mrf.mxu3 }
 0x1a0   :  { %v420_v14 = vsub.f32 %v335_v0, %v406_v33  ;;  %v428_v15 = vadd.f32 %v406_v33, %v335_v0  ;;  %v421_v16 = vsub.f32 %v364_v1, %v406_v33  ;;  %v429_v17 = vadd.f32 %v406_v33, %v364_v1 }
 0x1a1   :  { %v450_v54 = vsub.f32 %v434_v47, %v442_v48  ;;  %v451_v55 = vsub.f32 %v435_v51, %v443_v52 }
 0x1a2   :  { %v436_v40 = vmax.f32 %v428_v15, 0.0  ;;  %v444_v41 = vmul.f32 %v420_v14, %v420_v14  ;;  %v437_v42 = vmax.f32 %v429_v17, 0.0  ;;  %v445_v43 = vmul.f32 %v421_v16, %v421_v16 }
 0x1a4   :  { %v411_v5 = vpop.permute.xlu1 %410  ;;  %v452_v53 = vsub.f32 %v436_v40, %v444_v41  ;;  %v453_v19 = vsub.f32 %v437_v42, %v445_v43 }
 0x1a7   :  { %v338_v2 = vpop.f32.mrf.mxu2  ;;  %v367_v3 = vpop.f32.mrf.mxu3 }
 0x1a8   :  { %v422_v6 = vsub.f32 %v338_v2, %v411_v5  ;;  %v430_v7 = vadd.f32 %v411_v5, %v338_v2  ;;  %v423_v8 = vsub.f32 %v367_v3, %v411_v5  ;;  %v431_v9 = vadd.f32 %v411_v5, %v367_v3 }
 0x1aa   :  { %v438_v30 = vmax.f32 %v430_v7, 0.0  ;;  %v446_v31 = vmul.f32 %v422_v6, %v422_v6  ;;  %v439_v34 = vmax.f32 %v431_v9, 0.0  ;;  %v447_v35 = vmul.f32 %v423_v8, %v423_v8 }
 0x1ac   :  { %v454_v49 = vsub.f32 %v438_v30, %v446_v31  ;;  %v455_v50 = vsub.f32 %v439_v34, %v447_v35 }
 0x1af   :  { %v341_v18 = vpop.f32.mrf.mxu2  ;;  %v370_v20 = vpop.f32.mrf.mxu3 }
 0x1b0   :  { %v424_v21 = vsub.f32 %v341_v18, %v416_v62  ;;  %v432_v25 = vadd.f32 %v416_v62, %v341_v18  ;;  %v425_v28 = vsub.f32 %v370_v20, %v416_v62  ;;  %v433_v29 = vadd.f32 %v416_v62, %v370_v20 }
 0x1b2   :  { %v440_v36 = vmax.f32 %v432_v25, 0.0  ;;  %v448_v37 = vmul.f32 %v424_v21, %v424_v21  ;;  %v441_v38 = vmax.f32 %v433_v29, 0.0  ;;  %v449_v39 = vmul.f32 %v425_v28, %v425_v28 }
 0x1b4   :  { %v456_v45 = vsub.f32 %v440_v36, %v448_v37  ;;  %v457_v46 = vsub.f32 %v441_v38, %v449_v39 }
 0x1b6   :  { %470 = vmatpush.msrb.mxu0 %v456_v45  ;;  %490 = vmatpush.msrb.mxu1 %v457_v46 }
 0x1b8   :  { %471 = vmatpush.msrb.mxu0 %v454_v49  ;;  %491 = vmatpush.msrb.mxu1 %v455_v50 }
 0x1ba   :  { %472 = vmatpush.msrb.mxu0 %v452_v53  ;;  %492 = vmatpush.msrb.mxu1 %v453_v19 }
 0x1bc   :  { %473 = vmatpush.msrb.mxu0 %v450_v54  ;;  %493 = vmatpush.msrb.mxu1 %v451_v55 }
 0x1bd   :  { %543 = vmatmul.msk.f32.vlgmr.msrb.gmra.mxu0 %vm96_vm0, %v814_v44  ;;  %544 = vmatmul.msk.f32.vlgmr.msrb.gmra.mxu1 %vm96_vm0, %v814_v44 }
 0x23a   :  { %v475_v22 = vpop.f32.mrf.mxu0  ;;  %v495_v56 = vpop.f32.mrf.mxu1 }
 0x23b   :  { %v496_v57 = vadd.f32 %v495_v56, %v840_v58  ;;  %v476_v23 = vadd.f32 %v475_v22, %v840_v58 }
 0x23d   :  { %v500_v59 = vrot.slane %v496_v57, 4 }
 0x23f   :  { %v501_v24 = vsel %vm302_vm1, %v476_v23, %v500_v59 }
 0x240   :  { %504 = vst [vmem:[#allocation8 + $0x8] sm:$0xff] %v501_v24 }
 0x241   :  { %517 = dma.vmem_to_hbm [thread:$0]  %s510_s12, 256, %s512_s1, [#allocation4], %s668_s18, %s668_s18, %s669_s19  }
 0x242   :  { %660 = dma.done.wait [#allocation4], 256  }
 0x243   :  { %661 = vsyncadd [#allocation4], 4294967040 }
 0x244   :  { %522 = vsyncpa [#allocation3], 1 }
 0x245   :  { %523 = vsyncpa [#allocation6], 1 }
 0x246   :  { %524 = vsyncpa [#allocation4], 1 }

</bundles_post_ra>
